<compile_context>
chip_gen: v7x
topology: tpu7x:2x2x1
jax: 0.10.0
libtpu: 0.0.40
codegen_flags: <defaults>
</compile_context>

<pallas_src>
import jax
import jax.numpy as jnp
from jax.experimental import pallas as pl
from jax.experimental.pallas import tpu as pltpu

C_IN = 58      # conv in_channels  (fixed by the module)
C_OUT = 232    # conv out_channels (fixed by the module)

LANE_TILE = 1024        # HW tile width (multiple of 128) when HW is very large
LANE_TILE_MAX = 4096    # HW <= this -> take the whole HW row as one contiguous tile


def _cdiv(a, b):
    return -(-a // b)


def _round_up(v, m):
    return _cdiv(v, m) * m


def _tpu_params():
    """Per-generation tuning: (block_bytes_target, vmem_cap_bytes, num_tensorcores)."""
    try:
        kind = jax.devices()[0].device_kind.lower()
    except Exception:
        kind = ""
    if "v7" in kind or "7x" in kind:
        # 64 MiB VMEM/TC, ~3.2 TB/s HBM, 2 TensorCores per chip.
        return 6 * 1024 * 1024, 48 * 1024 * 1024, 2
    if "v6" in kind:
        # 128 MiB VMEM, ~1.4 TB/s HBM.
        return 2 * 1024 * 1024, 96 * 1024 * 1024, 1
    if "v5e" in kind or "v5 lite" in kind or "v5lite" in kind:
        # 128 MiB physical VMEM but 16 MiB scoped default / ~820 GB/s HBM.
        return 2 * 1024 * 1024, 64 * 1024 * 1024, 1
    # Unknown generation: conservative (48 MiB is safe on every known chip).
    return 2 * 1024 * 1024, 48 * 1024 * 1024, 1


def _fused_kernel(s_ref, wt_ref, b_ref, x_ref, o_ref):
    # s_ref : [NB, 1, C_IN]     f32   batch-blocked squeeze input
    # wt_ref: [C_IN, C_OUT]     f32   transposed 1x1 conv weight (resident, const index)
    # b_ref : [1, C_OUT]        f32   conv bias (resident, const index)
    # x_ref : [NB, C_OUT, THW]  feature-map tile, native dtype
    # o_ref : [NB, C_OUT, THW]
    s = jnp.maximum(s_ref[:, 0, :], jnp.float32(0.0))                  # ReLU (VPU)
    z = jnp.dot(s, wt_ref[...], preferred_element_type=jnp.float32)    # 1x1 conv (MXU)
    g = jax.nn.sigmoid(z + b_ref[...])                                 # sigmoid (EUP)
    g = g.astype(x_ref.dtype)[:, :, None]                              # [NB, C_OUT, 1]
    o_ref[...] = (g * x_ref[...]).astype(o_ref.dtype)                  # broadcast mul


def se_gate_forward(x29, x27, weight, bias):
    """x29: [N, C_IN, 1, 1], x27: [N, C_OUT, H, W],
    weight: [C_OUT, C_IN, 1, 1], bias: [C_OUT].  Returns [N, C_OUT, H, W]."""
    N, cin, _, _ = x29.shape
    n2, cout, H, W = x27.shape
    assert cin == C_IN and cout == C_OUT and n2 == N
    HW = H * W

    block_target, vmem_cap, num_cores = _tpu_params()
    min_steps = max(4, 2 * num_cores)

    # Tiny gate inputs (f32, a few KB total) -> resident / batch-blocked in VMEM.
    s = x29.reshape(N, 1, C_IN).astype(jnp.float32)            # [N, 1, C_IN]
    wt = weight.reshape(C_OUT, C_IN).T.astype(jnp.float32)     # [C_IN, C_OUT]
    b2 = bias.reshape(1, C_OUT).astype(jnp.float32)            # [1, C_OUT]

    # Feature map stays in its native dtype; free metadata reshape.
    xf = x27.reshape(N, C_OUT, HW)
    itemsize = xf.dtype.itemsize

    # ---- HW tiling: whole row when moderate (contiguous DMA), else 128-multiples.
    thw = HW if HW <= LANE_TILE_MAX else LANE_TILE
    n_hw = _cdiv(HW, thw)

    # ---- Batch blocking: hit ~block_target bytes per step, but keep >= min_steps
    #      grid steps so the pipeline / megacore sharding never collapses.
    per_n_bytes = C_OUT * thw * itemsize
    nb_cap_bytes = max(1, block_target // max(per_n_bytes, 1))
    nb_cap_steps = max(1, (N * n_hw) // min_steps)
    nb_want = max(1, min(nb_cap_bytes, nb_cap_steps, N))
    nb = 1
    for d in range(1, nb_want + 1):
        if N % d == 0:
            nb = d

    # ---- Grid-collapse guard: if there are still too few steps and each step moves
    #      real data, split HW into lane-dense 128-multiple tiles (e.g. 3136 -> 4x896).
    if (N // nb) * n_hw < min_steps and HW >= 256 and nb * per_n_bytes > (1 << 20):
        want_hw_splits = _cdiv(min_steps, N // nb)
        thw = max(128, _round_up(_cdiv(HW, want_hw_splits), 128))
        n_hw = _cdiv(HW, thw)

    # ---- Explicit VMEM limit: 2x input + 2x output blocks + resident gate params.
    blk_bytes = nb * C_OUT * thw * itemsize
    fixed_bytes = 2 * (C_IN * C_OUT * 4 + C_OUT * 4 + nb * C_IN * 4)
    vmem_limit = int(min(vmem_cap,
                         max(4 * blk_bytes + fixed_bytes + (4 << 20), 16 << 20)))

    out = pl.pallas_call(
        _fused_kernel,
        out_shape=jax.ShapeDtypeStruct((N, C_OUT, HW), x27.dtype),
        grid_spec=pltpu.PrefetchScalarGridSpec(
            num_scalar_prefetch=0,
            grid=(N // nb, n_hw),
            in_specs=[
                pl.BlockSpec((nb, 1, C_IN), lambda n, j: (n, 0, 0)),     # squeeze input
                pl.BlockSpec((C_IN, C_OUT), lambda n, j: (0, 0)),        # weight (resident)
                pl.BlockSpec((1, C_OUT), lambda n, j: (0, 0)),           # bias (resident)
                pl.BlockSpec((nb, C_OUT, thw), lambda n, j: (n, 0, j)),  # feature map
            ],
            out_specs=pl.BlockSpec((nb, C_OUT, thw), lambda n, j: (n, 0, j)),
        ),
        compiler_params=pltpu.CompilerParams(
            dimension_semantics=("parallel", "parallel"),
            vmem_limit_bytes=vmem_limit),
    )(s, wt, b2, xf)

    return out.reshape(N, C_OUT, H, W)


def _reference(x29, x27, weight, bias):
    s = jnp.maximum(x29.reshape(x29.shape[0], C_IN).astype(jnp.float32), 0.0)
    z = s @ weight.reshape(C_OUT, C_IN).astype(jnp.float32).T \
        + bias.astype(jnp.float32)[None, :]
    g = jax.nn.sigmoid(z)
    return (g[:, :, None, None] * x27.astype(jnp.float32)).astype(x27.dtype)


if __name__ == "__main__":
    key = jax.random.PRNGKey(0)
    k1, k2, k3, k4 = jax.random.split(key, 4)

    # Small-but-consistent shapes: channels fixed by the conv (58 -> 232),
    # batch=2 and spatial=16x16 instead of 56x56.
    N, H, W = 2, 16, 16
    x29 = jax.random.normal(k1, (N, C_IN, 1, 1), dtype=jnp.float32)
    x27 = jax.random.normal(k2, (N, C_OUT, H, W), dtype=jnp.float32)

    # Deterministic parameter init (Conv2d(58, 232, kernel_size=1) shapes).
    fan_in = C_IN  # 1x1 kernel
    bound = 1.0 / (fan_in ** 0.5)
    weight = jax.random.uniform(k3, (C_OUT, C_IN, 1, 1), jnp.float32,
                                minval=-bound, maxval=bound)
    bias = jax.random.uniform(k4, (C_OUT,), jnp.float32,
                              minval=-bound, maxval=bound)

    out = se_gate_forward(x29, x27, weight, bias)
    out = jax.block_until_ready(out)

    ref = _reference(x29, x27, weight, bias)
    assert out.shape == (N, C_OUT, H, W)
    assert out.dtype == x27.dtype
    assert jnp.allclose(out, ref, rtol=1e-4, atol=1e-5), "mismatch vs reference"

    print("KERNEL_OK")
</pallas_src>

<mosaic_0001>
module attributes {stable_mosaic.version = 11 : i64} {
  func.func @_fused_kernel(%arg0: i32, %arg1: i32, %arg2: memref<1x1x58xf32, #tpu.memory_space<vmem>>, %arg3: memref<58x232xf32, #tpu.memory_space<vmem>>, %arg4: memref<1x232xf32, #tpu.memory_space<vmem>>, %arg5: memref<1x232x256xf32, #tpu.memory_space<vmem>>, %arg6: memref<1x232x256xf32, #tpu.memory_space<vmem>>) attributes {dimension_semantics = [#tpu.dimension_semantics<parallel>, #tpu.dimension_semantics<parallel>], iteration_bounds = array<i64: 2, 1>, scalar_prefetch = 0 : i64, scratch_operands = 0 : i64, tpu.core_type = #tpu.core_type<tc>, window_params = [{transform_indices = @transform_0, window_bounds = array<i64: 1, 1, 58>}, {pipeline_mode = #tpu.pipeline_mode<synchronous>, transform_indices = @transform_1, window_bounds = array<i64: 58, 232>}, {pipeline_mode = #tpu.pipeline_mode<synchronous>, transform_indices = @transform_2, window_bounds = array<i64: 1, 232>}, {transform_indices = @transform_3, window_bounds = array<i64: 1, 232, 256>}, {transform_indices = @transform_4, window_bounds = array<i64: 1, 232, 256>}]} {
    %c0 = arith.constant 0 : index
    %c0_0 = arith.constant 0 : index
    %c0_1 = arith.constant 0 : index
    %0 = vector.load %arg2[%c0, %c0_0, %c0_1] : memref<1x1x58xf32, #tpu.memory_space<vmem>>, vector<1x1x58xf32>
    %1 = vector.shape_cast %0 : vector<1x1x58xf32> to vector<1x58xf32>
    %cst = arith.constant 0.000000e+00 : f32
    %2 = vector.broadcast %cst : f32 to vector<1x58xf32>
    %3 = arith.maximumf %1, %2 : vector<1x58xf32>
    %c0_2 = arith.constant 0 : index
    %c0_3 = arith.constant 0 : index
    %4 = vector.load %arg3[%c0_2, %c0_3] : memref<58x232xf32, #tpu.memory_space<vmem>>, vector<58x232xf32>
    %cst_4 = arith.constant dense<0.000000e+00> : vector<1x232xf32>
    %5 = tpu.matmul %3, %4, %cst_4 {dimension_numbers = #tpu.dot_dimension_numbers<[1], [0], [0], [1], [0, 0, 1, 1], [], []>} : vector<1x58xf32>, vector<58x232xf32>, vector<1x232xf32> -> vector<1x232xf32>
    %c0_5 = arith.constant 0 : index
    %c0_6 = arith.constant 0 : index
    %6 = vector.load %arg4[%c0_5, %c0_6] : memref<1x232xf32, #tpu.memory_space<vmem>>, vector<1x232xf32>
    %7 = arith.addf %5, %6 : vector<1x232xf32>
    %8 = arith.negf %7 : vector<1x232xf32>
    %9 = math.exp %8 : vector<1x232xf32>
    %cst_7 = arith.constant 1.000000e+00 : f32
    %10 = vector.broadcast %cst_7 : f32 to vector<1x232xf32>
    %11 = arith.addf %10, %9 : vector<1x232xf32>
    %12 = arith.divf %10, %11 : vector<1x232xf32>
    %13 = vector.shape_cast %12 : vector<1x232xf32> to vector<1x232x1xf32>
    %c0_8 = arith.constant 0 : index
    %c0_9 = arith.constant 0 : index
    %c0_10 = arith.constant 0 : index
    %14 = vector.load %arg5[%c0_8, %c0_9, %c0_10] : memref<1x232x256xf32, #tpu.memory_space<vmem>>, vector<1x232x256xf32>
    %15 = vector.broadcast %13 : vector<1x232x1xf32> to vector<1x232x256xf32>
    %16 = arith.mulf %15, %14 : vector<1x232x256xf32>
    %c0_11 = arith.constant 0 : index
    %c0_12 = arith.constant 0 : index
    %c0_13 = arith.constant 0 : index
    %17 = vector.load %arg6[%c0_11, %c0_12, %c0_13] : memref<1x232x256xf32, #tpu.memory_space<vmem>>, vector<1x232x256xf32>
    tpu.vector_store %arg6[%c0_11, %c0_12, %c0_13], %16 {strides = array<i32>} : memref<1x232x256xf32, #tpu.memory_space<vmem>>, vector<1x232x256xf32>,
    return
  }
  func.func @transform_0(%arg0: i32, %arg1: i32) -> (i32, i32, i32) {
    %c0_i32 = arith.constant 0 : i32
    %c0_i32_0 = arith.constant 0 : i32
    %c0_i32_1 = arith.constant 0 : i32
    return %arg0, %c0_i32, %c0_i32_0 : i32, i32, i32
  }
  func.func @transform_1(%arg0: i32, %arg1: i32) -> (i32, i32) {
    %c0_i32 = arith.constant 0 : i32
    %c0_i32_0 = arith.constant 0 : i32
    %c0_i32_1 = arith.constant 0 : i32
    return %c0_i32, %c0_i32_0 : i32, i32
  }
  func.func @transform_2(%arg0: i32, %arg1: i32) -> (i32, i32) {
    %c0_i32 = arith.constant 0 : i32
    %c0_i32_0 = arith.constant 0 : i32
    %c0_i32_1 = arith.constant 0 : i32
    return %c0_i32, %c0_i32_0 : i32, i32
  }
  func.func @transform_3(%arg0: i32, %arg1: i32) -> (i32, i32, i32) {
    %c0_i32 = arith.constant 0 : i32
    %c0_i32_0 = arith.constant 0 : i32
    return %arg0, %c0_i32, %arg1 : i32, i32, i32
  }
  func.func @transform_4(%arg0: i32, %arg1: i32) -> (i32, i32, i32) {
    %c0_i32 = arith.constant 0 : i32
    %c0_i32_0 = arith.constant 0 : i32
    return %arg0, %c0_i32, %arg1 : i32, i32, i32
  }
}

</mosaic_0001>

<bundles_post_ra>
// kernel: tpu_custom_call.1
= control target key start
LH: loop header
LB: loop body
LE: loop exit
PB: predicated region body
PF: predicated region fallthrough
CT: control target
= control target key end

     0   :  { %s1569_s0 = inlined_call_operand.hbm [shape: f32[2,1,58], index: 0, kind: input, shape index: {}]   ;;  %s1570_s1 = inlined_call_operand.hbm [shape: f32[58,232], index: 1, kind: input, shape index: {}]   ;;  %s1571_s2 = inlined_call_operand.vmem [shape: f32[1,232], index: 2, kind: input, shape index: {}]   ;;  %s1572_s3 = inlined_call_operand.hbm [shape: f32[2,232,256], index: 3, kind: input, shape index: {}]   ;;  %s1573_s4 = inlined_call_operand.hbm [shape: f32[2,232,256], index: 4, kind: output, shape index: {}]  }
   0x1   :  { %1579 = sst [smem:[#allocation14_spill]] %s1569_s0 }
   0x2   :  { %1580 = sst [smem:[#allocation15_spill]] %s1572_s3 }
   0x3   :  { %9 = vsyncpa [#allocation3], 0 }
   0x4   :  { %11 = vsyncpa [#allocation3 + $0x1], 0 }
   0x5   :  { %12 = vsyncpa [#allocation6], 0 }
   0x6   :  { %13 = vsyncpa [#allocation4], 0 }
   0x7   :  { %15 = vsyncpa [#allocation4 + $0x1], 0  ;;  %s1178_s15 = smov 0   ;;  %s1180_s16 = smov 0  }
   0x8   :  { %s1182_s17 = smov 0   ;;  %s1184_s18 = smov 0  }
   0x9   :  { %s1186_s19 = smov 0   ;;  %s1188_s20 = smov 0  }
   0xa LB: > { %s33_s21 = sadd.s32 1, %s1137_s19  ;;  %s40_s22 = sadd.s32 1, %s1129_s17  ;;  %s1141_s20 = sphi %s1188_s20, %s21_s20   ;;  %s1137_s19 = sphi %s1186_s19, %s1602_s19   ;;  %s1133_s18 = sphi %s1184_s18, %s1601_s18   ;;  %s1129_s17 = sphi %s1182_s17, %s1600_s17   ;;  %s1125_s16 = sphi %s1180_s16, %s1599_s16   ;;  %s1121_s15 = sphi %s1178_s15, %s1598_s15  }
   0xb   : > { %p35_p0 = scmp.ge.s32.totalorder %s33_s21, 2  ;;  %p47_p1 = scmp.ne.s32.totalorder %s1129_s17, %s1125_s16 }
   0xc   : > { %p48_p2 = scmp.eq.s32.totalorder %s1141_s20, 0  ;;  %p897_p5 = scmp.lt.s32.totalorder %s1141_s20, 2 }
   0xd   : > { %s1604_s21 = smov (%p35_p0, %s33_s21), 0  ;;  %s191_s24 = sand.u32 1, %s1141_s20  }
   0xe   : > { %1581 = sst [smem:[#allocation13_spill]] %s1604_s21  ;;  %p49_p4 = por %p48_p2, %p47_p1 }
   0xf   : > { %s37_s23 = ssub.s32 %s1137_s19, %s1604_s21  ;;  %s193_s25 = sand.u32 1, %s1129_s17  }
  0x10   : > { %p38_p6 = scmp.eq.s32.totalorder %s37_s23, 0  ;;  %s837_s26 = sshll.u32 %s1137_s19, 4 }
  0x11   : > { %s1582_s0 = sld [smem:[#allocation14_spill]]  ;;  %s194_s5 = scalar_lea.vmem [#allocation2], %s193_s25 }
  0x12   : > { %s1226_s27 = scalar_select %p38_p6, %s1129_s17, %s40_s22  }
  0x13   : > { %s201_s6 = sshll.u32 %s194_s5, 4  ;;  %p1233_p7 = pnand %p897_p5, %p49_p4  ;;  %s1237_s6 = int_to_ptr.vmem [resolvable:$true] %s201_s6 }
  0x14   : > { %s1239_s8 = smul.u32 464, %s193_s25  ;;  %s1241_s9 = scalar_lea.sflag [#allocation3], %s191_s24 }
  0x15   : > { %p965_p9 = pneg %p1233_p7 }
  0x17   : > { %s1231_s30 = scalar_lea.hbm %s1582_s0, %s837_s26  ;;  %s968_s13 = scalar_lea.hbm %s1582_s0, 32 }
  0x18   : > { %s963_s10 = scalar_lea.hbm %s1231_s30, 16  ;;  %p969_p12 = scmp.lt.u32.totalorder %s1231_s30, %s1582_s0 }
  0x19   : > { %p964_p8 = scmp.ne.s32.totalorder %s1231_s30, %s963_s10  ;;  %p970_p13 = scmp.lt.u32.totalorder %s968_s13, %s963_s10 }
  0x1a   : > { %p972_p2 = scmp.lt.u32.totalorder %s963_s10, %s1231_s30 }
  0x1b   : > { %p966_p10 = pnand %p965_p9, %p964_p8  ;;  %p971_p0 = por %p970_p13, %p969_p12 }
  0x1d   : > { %p967_p11 = pneg %p966_p10  ;;  %p973_p4 = por %p972_p2, %p971_p0 }
  0x1f   : > { %p974_p5 = pnand %p973_p4, %p967_p11 }
  0x21   : > { %977 = shalt.err (!%p974_p5)
}
  0x22   : > { %s978_s23 = scalar_lea.vmem %s1237_s6, 16  ;;  %s1143_s24 = smov [#allocation2]  }
  0x23   : > { %p979_p6 = scmp.ne.s32.totalorder %s1237_s6, %s978_s23  ;;  %s983_s25 = sshll.u32 %s1143_s24, 4  ;;  %s984_s25 = int_to_ptr.vmem [resolvable:$false] %s983_s25 }
  0x24   : > { %s985_s26 = scalar_lea.vmem %s984_s25, 32  ;;  %p986_p3 = scmp.lt.s32.totalorder %s1237_s6, %s984_s25 }
  0x25   : > { %p981_p8 = pnand %p979_p6, %p965_p9  ;;  %p987_p12 = scmp.lt.s32.totalorder %s985_s26, %s978_s23 }
  0x27   : > { %p982_p10 = pneg %p981_p8  ;;  %p988_p13 = por %p987_p12, %p986_p3 }
  0x29   : > { %p989_p0 = pnand %p988_p13, %p982_p10 }
  0x2b   : > { %992 = shalt.err (!%p989_p0)
}
  0x2c   : > { %888 = dma.hbm_to_vmem [thread:$0]  (!%p1233_p7), %s1231_s30, 16, %s1237_s6, %s1241_s9  }
  0x2d   : > { %s868_s28 = smul.u32 7424, %s1137_s19  ;;  %s212_s29 = scalar_lea.vmem [#allocation7], %s1239_s8 }
  0x2e   : > { %s221_s5 = sshll.u32 %s212_s29, 4  ;;  %s1272_s10 = sadd.s32 4294967295, %s1141_s20   ;;  %s1298_s5 = int_to_ptr.vmem [resolvable:$true] %s221_s5 }
  0x2f   : > { %s833_s11 = sadd.s32 4294967294, %s1141_s20   ;;  %p53_p3 = scmp.ne.s32.totalorder %s1125_s16, %s1121_s15 }
  0x30   : > { %p1574_p11 = scmp.eq.s32.totalorder %s1272_s10, 0  ;;  %p149_p2 = scmp.eq.s32.totalorder %s1272_s10, 1 }
  0x31   : > { %p155_p4 = scmp.eq.s32.totalorder %s833_s11, 1  ;;  %p834_p5 = scmp.ge.s32.totalorder %s1141_s20, 1 }
  0x32   : > { %p1282_p6 = por %p1574_p11, %p53_p3  ;;  %p1289_p8 = por %p149_p2, %p47_p1 }
  0x33   : > { %p1293_p10 = por %p155_p4, %p53_p3  ;;  %p162_p12 = scmp.lt.s32.totalorder %s1141_s20, 3 }
  0x34   : > { %s1584_s12 = scalar_select %p1282_p6, 1, 0 }
  0x35   : > { %s1585_s30 = scalar_select %p1289_p8, 1, 0 }
  0x36   : > { %s1586_s6 = scalar_select %p1293_p10, 1, 0 }
  0x37   : > { %p1300_p13 = pnand %p834_p5, %p162_p12  ;;  %s1144_s13 = smov [#allocation5]  }
  0x38   : > { %s174_s14 = sshll.u32 %s1144_s13, 4  ;;  %s1588_s3 = sld [smem:[#allocation15_spill]]  ;;  %s1311_s14 = int_to_ptr.vmem [resolvable:$true] %s174_s14 }
  0x39   : > { %s1587_s8 = scalar_select %p1300_p13, 1, 0 }
  0x3a   : > { %p881_p0 = pneg %p1300_p13 }
  0x3c   : > { %p1315_p1 = pnand %p881_p0, %p1574_p11 }
  0x3e   : > { %s1309_s24 = scalar_lea.hbm %s1588_s3, %s868_s28  ;;  %s998_s11 = scalar_lea.hbm %s1588_s3, 14848 }
  0x3f   : > { %s993_s26 = scalar_lea.hbm %s1309_s24, 7424  ;;  %p999_p5 = scmp.lt.u32.totalorder %s1309_s24, %s1588_s3 }
  0x40   : > { %p994_p3 = scmp.ne.s32.totalorder %s1309_s24, %s993_s26  ;;  %p1000_p12 = scmp.lt.u32.totalorder %s998_s11, %s993_s26 }
  0x41   : > { %p1002_p0 = scmp.lt.u32.totalorder %s993_s26, %s1309_s24 }
  0x42   : > { %p996_p2 = pnand %p994_p3, %p965_p9  ;;  %p1001_p10 = por %p1000_p12, %p999_p5 }
  0x44   : > { %p997_p4 = pneg %p996_p2  ;;  %p1003_p11 = por %p1002_p0, %p1001_p10 }
  0x46   : > { %p1004_p8 = pnand %p1003_p11, %p997_p4 }
  0x48   : > { %1007 = shalt.err (!%p1004_p8)
}
  0x49   : > { %s1008_s23 = scalar_lea.vmem %s1298_s5, 7424  ;;  %s1145_s29 = smov [#allocation7]  }
  0x4a   : > { %p1009_p3 = scmp.ne.s32.totalorder %s1298_s5, %s1008_s23  ;;  %s1013_s28 = sshll.u32 %s1145_s29, 4  ;;  %s1014_s28 = int_to_ptr.vmem [resolvable:$false] %s1013_s28 }
  0x4b   : > { %s1015_s13 = scalar_lea.vmem %s1014_s28, 14848  ;;  %p1016_p13 = scmp.lt.s32.totalorder %s1298_s5, %s1014_s28 }
  0x4c   : > { %p1011_p2 = pnand %p1009_p3, %p965_p9  ;;  %p1017_p5 = scmp.lt.s32.totalorder %s1015_s13, %s1008_s23 }
  0x4e   : > { %p1012_p6 = pneg %p1011_p2  ;;  %p1018_p12 = por %p1017_p5, %p1016_p13 }
  0x50   : > { %p1019_p10 = pnand %p1018_p12, %p1012_p6 }
  0x52   : > { %1022 = shalt.err (!%p1019_p10)
}
  0x53   : > { %s1146_s26 = smov 256   ;;  %s1147_s11 = smov 16  }
  0x54   : > { %891 = dma.hbm_to_vmem [thread:$0]  (!%p1233_p7), %s1309_s24, 7424, %s1298_s5, %s1241_s9, %s1146_s26, %s1146_s26, %s1147_s11  }
  0x55   : > { %s1023_s29 = scalar_lea.hbm %s1570_s1, 2048  ;;  %p1025_p11 = pneg %p1315_p1 }
  0x56   : > { %p1024_p9 = scmp.ne.s32.totalorder %s1570_s1, %s1023_s29  ;;  %p1030_p13 = scmp.lt.u32.totalorder %s1023_s29, %s1570_s1 }
  0x58   : > { %p1026_p6 = pnand %p1025_p11, %p1024_p9 }
  0x5a   : > { %p1027_p8 = pneg %p1026_p6 }
  0x5c   : > { %p1032_p4 = pnand %p1030_p13, %p1027_p8 }
  0x5e   : > { %1035 = shalt.err (!%p1032_p4)
}
  0x5f   : > { %s1036_s7 = scalar_lea.vmem %s1311_s14, 2048  ;;  %p1044_p2 = scmp.lt.s32.totalorder %s1311_s14, %s1311_s14 }
  0x60   : > { %p1037_p7 = scmp.ne.s32.totalorder %s1311_s14, %s1036_s7  ;;  %p1045_p5 = scmp.lt.s32.totalorder %s1036_s7, %s1036_s7 }
  0x62   : > { %p1039_p0 = pnand %p1037_p7, %p1025_p11  ;;  %p1046_p12 = por %p1045_p5, %p1044_p2 }
  0x64   : > { %p1040_p3 = pneg %p1039_p0 }
  0x66   : > { %p1047_p10 = pnand %p1046_p12, %p1040_p3 }
  0x68   : > { %1050 = shalt.err (!%p1047_p10)
}
  0x69   : > { %884 = dma.hbm_to_vmem [thread:$0]  (!%p1315_p1), %s1570_s1, 2048, %s1311_s14, [#allocation6], %s1146_s26, %s1146_s26, %s1147_s11  }
  0x6a   : > { %p1590_p9 = scmp.ne.s32.totalorder %s1587_s8, 0 }
  0x6b   : > { %s235_s21 = sand.u32 (!%p1590_p9), 1, %s1272_s10   ;;  %s1368_s9 = sand.u32 (!%p1590_p9), 1, %s1125_s16  }
  0x6c   : > { %233 = sbr.rel (%p1590_p9) target bundleno = 572 (0x23c), region = 36  ;;  %s236_s5 = scalar_lea.sflag (!%p1590_p9), [#allocation3], %s235_s21 }
  0x6d   : > { %s238_s24 = scalar_lea.vmem (!%p1590_p9), [#allocation2], %s1368_s9  ;;  %p1591_p11 = scmp.ne.s32.totalorder (!%p1590_p9), %s1584_s12, 0 }
  0x73   : > { %1104 = dma.done.wait (%p1591_p11), %s236_s5, 16  }
  0x74   : > { %1106 = vsyncadd (%p1591_p11), %s236_s5, 4294967280  ;;  %p1592_p6 = scmp.eq.s32.totalorder %s1272_s10, 0 }
  0x76   : > { %1108 = dma.done.wait (%p1592_p6), [#allocation6], 2048   ;;  %p1593_p1 = pmov %p1592_p6 }
  0x77   : > { %s869_s8 = smul.u32 464, %s1368_s9 }
  0x78   : > { %1110 = vsyncadd (%p1593_p1), [#allocation6], 4294965248 }
  0x79   : > { %s1382_s14 = scalar_lea.vmem [#allocation7], %s869_s8 }
  0x7a   : > { %1112 = dma.done.wait (%p1591_p11), %s236_s5, 7424  }
  0x7b   : > { %1114 = vsyncadd (%p1591_p11), %s236_s5, 4294959872  ;;  %v1148_v0 = vmov 0.0   ;;  %v285_v1 = vld [vmem:[#allocation5 + $0x8] sm:$0xff]  ;;  %v287_v2 = vld [vmem:[#allocation5 + $0x18] sm:$0xff]  ;;  %vm316_vm0 = vcmask 1041408   ;;  %vm1149_vm1 = vmmov 1   ;;  %v302_v27 = vlaneseq }
  0x7c   : > { %387 = vmatprep.mubr.f32.mxu0 %v1148_v0  ;;  %v284_v3 = vld [vmem:[#allocation5] sm:$0xff]  ;;  %v849_v4 = vpack.c.bf16 %v287_v2, %v285_v1  ;;  %v286_v5 = vld [vmem:[#allocation5 + $0x10] sm:$0xff]  ;;  %v289_v6 = vld [vmem:[#allocation5 + $0x28] sm:$0xff]  ;;  %vm312_vm3 = vcmask 474112   ;;  %s1403_s25 = scalar_lea.vmem [#allocation8], %s869_s8  ;;  %s870_s13 = smul.u32 7424, %s1133_s18 }
  0x7d   : > { %v291_v7 = vld [vmem:[#allocation5 + $0x38] sm:$0xff]  ;;  %v851_v8 = vpack.c.bf16 %v286_v5, %v284_v3  ;;  %v288_v10 = vld [vmem:[#allocation5 + $0x20] sm:$0xff]  ;;  %v290_v11 = vld [vmem:[#allocation5 + $0x30] sm:$0xff]  ;;  %v303_v28 = vshrl.u32 %v302_v27, 7  ;;  %s718_s26 = sshll.u32 %s1403_s25, 4  ;;  %s703_s29 = scalar_lea.sflag [#allocation4], %s1368_s9  ;;  %s1518_s26 = int_to_ptr.vmem [resolvable:$true] %s718_s26 }
  0x7e   : > { %v853_v9 = vpack.c.bf16 %v291_v7, %v289_v6  ;;  %v293_v12 = vld [vmem:[#allocation5 + $0x48] sm:$0xff]  ;;  %850 = vmatprep.subr.bf16.mxu0 %v849_v4  ;;  %v295_v13 = vld [vmem:[#allocation5 + $0x58] sm:$0xff]  ;;  %v855_v14 = vpack.c.bf16 %v290_v11, %v288_v10  ;;  %v292_v16 = vld [vmem:[#allocation5 + $0x40] sm:$0xff]  ;;  %s1516_s18 = scalar_lea.hbm %s1573_s4, %s870_s13  ;;  %s1051_s23 = scalar_lea.vmem %s1518_s26, 7424 }
  0x7f   : > { %852 = vmatpush1.bf16.msra.mxu0 %v851_v8  ;;  %v857_v15 = vpack.c.bf16 %v295_v13, %v293_v12  ;;  %v294_v17 = vld [vmem:[#allocation5 + $0x50] sm:$0xff]  ;;  %v297_v18 = vld [vmem:[#allocation5 + $0x68] sm:$0xff]  ;;  %v299_v19 = vld [vmem:[#allocation5 + $0x78] sm:$0x3]  ;;  %v304_v29 = vsub.s32 0, %v303_v28  ;;  %v308_v37 = vsub.s32 1, %v303_v28  ;;  %p1052_p8 = scmp.ne.s32.totalorder %s1518_s26, %s1051_s23 }
  0x80   : > { %854 = vmatprep.subr.bf16.mxu0 %v853_v9  ;;  %v859_v20 = vpack.c.bf16 %v294_v17, %v292_v16  ;;  %v861_v21 = vpack.c.bf16 %v299_v19, %v297_v18  ;;  %v296_v22 = vld [vmem:[#allocation5 + $0x60] sm:$0xff]  ;;  %v298_v23 = vld [vmem:[#allocation5 + $0x70] sm:$0x3]  ;;  %vm862_vm2 = vmpackc.low %vm316_vm0, %vm1149_vm1  ;;  %p1594_p13 = scmp.ne.s32.totalorder %s1585_s30, 0  ;;  %s1150_s28 = smov [#allocation8]  }
  0x81   : > { %v864_v24 = vpack.c.bf16 %v298_v23, %v296_v22  ;;  %v282_v25 = vld [vmem:[%s238_s24] sm:$0x1]  ;;  %v532_v48 = vld [vmem:[%s1382_s14 + $0x20] sm:$0xff]  ;;  %v534_v58 = vld [vmem:[%s1382_s14 + $0x30] sm:$0xff]  ;;  %s1055_s7 = sshll.u32 %s1150_s28, 4  ;;  %s1056_s7 = int_to_ptr.vmem [resolvable:$false] %s1055_s7 }
  0x82   : > { %v283_v26 = vmax.f32 %v282_v25, 0.0  ;;  %v300_v30 = vld [vmem:[%s1571_s2] sm:$0x3]  ;;  %v528_v50 = vld [vmem:[%s1382_s14] sm:$0xff]  ;;  %v530_v60 = vld [vmem:[%s1382_s14 + $0x10] sm:$0xff]  ;;  %p1053_p4 = pnand %p1052_p8, %p1594_p13  ;;  %s1057_s0 = scalar_lea.vmem %s1056_s7, 14848 }
  0x83   : > { %856 = vmatpush1.bf16.msra.mxu0 %v855_v14  ;;  %v305_v31 = vrot.slane %v300_v30, %v304_v29  ;;  %v309_v39 = vrot.slane %v300_v30, %v308_v37  ;;  %v533_v49 = vld [vmem:[%s1382_s14 + $0x28] sm:$0xff]  ;;  %v535_v59 = vld [vmem:[%s1382_s14 + $0x38] sm:$0xff]  ;;  %v538_v4 = vld [vmem:[%s1382_s14 + $0x50] sm:$0xff]  ;;  %p1058_p0 = scmp.lt.s32.totalorder %s1518_s26, %s1056_s7  ;;  %p1059_p3 = scmp.lt.s32.totalorder %s1057_s0, %s1051_s23 }
  0x84   : > { %858 = vmatprep.subr.bf16.mxu0 %v857_v15  ;;  %v529_v51 = vld [vmem:[%s1382_s14 + $0x8] sm:$0xff]  ;;  %v531_v61 = vld [vmem:[%s1382_s14 + $0x18] sm:$0xff]  ;;  %v536_v6 = vld [vmem:[%s1382_s14 + $0x40] sm:$0xff]  ;;  %p1054_p7 = pneg %p1053_p4 }
  0x85   : > { %v539_v5 = vld [vmem:[%s1382_s14 + $0x58] sm:$0xff]  ;;  %v537_v7 = vld [vmem:[%s1382_s14 + $0x48] sm:$0xff]  ;;  %v542_v14 = vld [vmem:[%s1382_s14 + $0x70] sm:$0xff]  ;;  %p1060_p2 = por %p1059_p3, %p1058_p0 }
  0x86   : > { %v543_v15 = vld [vmem:[%s1382_s14 + $0x78] sm:$0xff]  ;;  %v540_v16 = vld [vmem:[%s1382_s14 + $0x60] sm:$0xff]  ;;  %v541_v17 = vld [vmem:[%s1382_s14 + $0x68] sm:$0xff] }
  0x87   : > { %860 = vmatpush1.bf16.msra.mxu0 %v859_v20  ;;  %v547_v25 = vld [vmem:[%s1382_s14 + $0x98] sm:$0xff]  ;;  %v545_v27 = vld [vmem:[%s1382_s14 + $0x88] sm:$0xff]  ;;  %p1061_p5 = pnand %p1060_p2, %p1054_p7 }
  0x88   : > { %863 = vmatprep.subr.msk.bf16.mxu0 %vm862_vm2, %v861_v21  ;;  %v549_v37 = vld [vmem:[%s1382_s14 + $0xa8] sm:$0xff] }
  0x8b   : > { %866 = vmatpush1.bf16.msk.msra.mxu0 %vm862_vm2, %v864_v24  ;;  %v546_v24 = vld [vmem:[%s1382_s14 + $0x90] sm:$0xff] }
  0x8e   : > { %843 = vmatmul.mubr.msk.f32.vlgmr.msra.gmra.mrb[0].mxu0 %vm312_vm3, %v283_v26  ;;  %v544_v26 = vld [vmem:[%s1382_s14 + $0x80] sm:$0xff] }
 0x161   : > { %v389_v32 = vpop.f32.mrb[0].mxu0 }
 0x162   : > { %v390_v33 = vadd.f32 %v389_v32, %v305_v31  ;;  %v391_v34 = vpop.f32.mrb[1].mxu0 }
 0x163   : > { %v392_v40 = vadd.f32 %v391_v34, %v309_v39  ;;  %v550_v34 = vld [vmem:[%s1382_s14 + $0xb0] sm:$0xff] }
 0x164   : > { %v844_v35 = vmul.f32 -1.442695, %v390_v33 }
 0x165   : > { %v845_v41 = vmul.f32 -1.442695, %v392_v40 }
 0x166   : > { %955 = vpow2.f32 %v844_v35  ;;  %v551_v35 = vld [vmem:[%s1382_s14 + $0xb8] sm:$0xff] }
 0x170   : > { %v956_v36 = vpop.eup %955 }
 0x171   : > { %v400_v38 = vadd.f32 1.0, %v956_v36  ;;  %v548_v36 = vld [vmem:[%s1382_s14 + $0xa0] sm:$0xff] }
 0x173   : > { %957 = vrcp.f32 %v400_v38 }
 0x174   : > { %959 = vpow2.f32 %v845_v41 }
 0x17d   : > { %v958_v42 = vpop.eup %957 }
 0x17e   : > { %v409_v43 = vrot.slane %v958_v42, %v304_v29  ;;  %v960_v44 = vpop.eup %959 }
 0x17f   : > { %v401_v45 = vadd.f32 1.0, %v960_v44  ;;  %v554_v44 = vld [vmem:[%s1382_s14 + $0xd0] sm:$0xff] }
 0x180   : > { %419 = vbcast.lane.b32.xlu1 %v409_v43, 272  ;;  %411 = vbcast.lane.b32.xlu0 %v409_v43, 256 }
 0x181   : > { %961 = vrcp.f32 %v401_v45  ;;  %v555_v45 = vld [vmem:[%s1382_s14 + $0xd8] sm:$0xff] }
 0x184   : > { %423 = vbcast.lane.b32.xlu1 %v409_v43, 280  ;;  %415 = vbcast.lane.b32.xlu0 %v409_v43, 264 }
 0x188   : > { %431 = vbcast.lane.b32.xlu1 %v409_v43, 296  ;;  %427 = vbcast.lane.b32.xlu0 %v409_v43, 288 }
 0x18b   : > { %v962_v46 = vpop.eup %961 }
 0x18c   : > { %439 = vbcast.lane.b32.xlu1 %v409_v43, 312  ;;  %435 = vbcast.lane.b32.xlu0 %v409_v43, 304  ;;  %v476_v47 = vrot.slane %v962_v46, %v304_v29  ;;  %v552_v46 = vld [vmem:[%s1382_s14 + $0xc0] sm:$0xff] }
 0x190   : > { %447 = vbcast.lane.b32.xlu1 %v409_v43, 328  ;;  %443 = vbcast.lane.b32.xlu0 %v409_v43, 320 }
 0x194   : > { %455 = vbcast.lane.b32.xlu1 %v409_v43, 344  ;;  %451 = vbcast.lane.b32.xlu0 %v409_v43, 336 }
 0x198   : > { %463 = vbcast.lane.b32.xlu1 %v409_v43, 360  ;;  %459 = vbcast.lane.b32.xlu0 %v409_v43, 352 }
 0x19c   : > { %471 = vbcast.lane.b32.xlu1 %v409_v43, 376  ;;  %467 = vbcast.lane.b32.xlu0 %v409_v43, 368 }
 0x1a0   : > { %482 = vbcast.lane.b32.xlu1 %v476_v47, 264  ;;  %478 = vbcast.lane.b32.xlu0 %v476_v47, 256 }
 0x1a4   : > { %490 = vbcast.lane.b32.xlu1 %v476_v47, 280  ;;  %486 = vbcast.lane.b32.xlu0 %v476_v47, 272 }
 0x1a8   : > { %498 = vbcast.lane.b32.xlu1 %v476_v47, 296  ;;  %494 = vbcast.lane.b32.xlu0 %v476_v47, 288 }
 0x1ac   : > { %506 = vbcast.lane.b32.xlu1 %v476_v47, 312  ;;  %502 = vbcast.lane.b32.xlu0 %v476_v47, 304 }
 0x1b0   : > { %514 = vbcast.lane.b32.xlu1 %v476_v47, 328  ;;  %510 = vbcast.lane.b32.xlu0 %v476_v47, 320 }
 0x1b4   : > { %522 = vbcast.lane.b32.xlu1 %v476_v47, 344  ;;  %518 = vbcast.lane.b32.xlu0 %v476_v47, 336 }
 0x1b8   : > { %526 = vbcast.lane.b32.xlu0 %v476_v47, 352  ;;  %v553_v47 = vld [vmem:[%s1382_s14 + $0xc8] sm:$0xff] }
 0x1f2   : > { %v420_v52 = vpop.permute.xlu1 %419  ;;  %v412_v53 = vpop.permute.xlu0 %411 }
 0x1f3   : > { %v590_v54 = vmul.f32 %v532_v48, %v420_v52  ;;  %v591_v55 = vmul.f32 %v533_v49, %v420_v52  ;;  %v586_v56 = vmul.f32 %v528_v50, %v412_v53  ;;  %v587_v57 = vmul.f32 %v529_v51, %v412_v53 }
 0x1f5   : > { %648 = vst [vmem:[%s1403_s25 + $0x20] sm:$0xff] %v590_v54  ;;  %649 = vst [vmem:[%s1403_s25 + $0x28] sm:$0xff] %v591_v55  ;;  %v558_v54 = vld [vmem:[%s1382_s14 + $0xf0] sm:$0xff]  ;;  %v559_v55 = vld [vmem:[%s1382_s14 + $0xf8] sm:$0xff] }
 0x1f6   : > { %644 = vst [vmem:[%s1403_s25] sm:$0xff] %v586_v56  ;;  %645 = vst [vmem:[%s1403_s25 + $0x8] sm:$0xff] %v587_v57  ;;  %v424_v62 = vpop.permute.xlu1 %423  ;;  %v416_v63 = vpop.permute.xlu0 %415  ;;  %v556_v56 = vld [vmem:[%s1382_s14 + $0xe0] sm:$0xff]  ;;  %v557_v57 = vld [vmem:[%s1382_s14 + $0xe8] sm:$0xff] }
 0x1f7   : > { %v592_v0 = vmul.f32 %v534_v58, %v424_v62  ;;  %v593_v1 = vmul.f32 %v535_v59, %v424_v62  ;;  %v588_v2 = vmul.f32 %v530_v60, %v416_v63  ;;  %v589_v3 = vmul.f32 %v531_v61, %v416_v63 }
 0x1f9   : > { %650 = vst [vmem:[%s1403_s25 + $0x30] sm:$0xff] %v592_v0  ;;  %651 = vst [vmem:[%s1403_s25 + $0x38] sm:$0xff] %v593_v1  ;;  %v562_v0 = vld [vmem:[%s1382_s14 + $0x110] sm:$0xff]  ;;  %v563_v1 = vld [vmem:[%s1382_s14 + $0x118] sm:$0xff] }
 0x1fa   : > { %646 = vst [vmem:[%s1403_s25 + $0x10] sm:$0xff] %v588_v2  ;;  %647 = vst [vmem:[%s1403_s25 + $0x18] sm:$0xff] %v589_v3  ;;  %v432_v8 = vpop.permute.xlu1 %431  ;;  %v428_v9 = vpop.permute.xlu0 %427  ;;  %v560_v2 = vld [vmem:[%s1382_s14 + $0x100] sm:$0xff]  ;;  %v561_v3 = vld [vmem:[%s1382_s14 + $0x108] sm:$0xff] }
 0x1fb   : > { %v596_v10 = vmul.f32 %v538_v4, %v432_v8  ;;  %v597_v11 = vmul.f32 %v539_v5, %v432_v8  ;;  %v594_v12 = vmul.f32 %v536_v6, %v428_v9  ;;  %v595_v13 = vmul.f32 %v537_v7, %v428_v9 }
 0x1fd   : > { %654 = vst [vmem:[%s1403_s25 + $0x50] sm:$0xff] %v596_v10  ;;  %655 = vst [vmem:[%s1403_s25 + $0x58] sm:$0xff] %v597_v11  ;;  %v566_v10 = vld [vmem:[%s1382_s14 + $0x130] sm:$0xff]  ;;  %v567_v11 = vld [vmem:[%s1382_s14 + $0x138] sm:$0xff] }
 0x1fe   : > { %652 = vst [vmem:[%s1403_s25 + $0x40] sm:$0xff] %v594_v12  ;;  %653 = vst [vmem:[%s1403_s25 + $0x48] sm:$0xff] %v595_v13  ;;  %v440_v18 = vpop.permute.xlu1 %439  ;;  %v436_v19 = vpop.permute.xlu0 %435  ;;  %v564_v12 = vld [vmem:[%s1382_s14 + $0x120] sm:$0xff]  ;;  %v565_v13 = vld [vmem:[%s1382_s14 + $0x128] sm:$0xff] }
 0x1ff   : > { %v600_v20 = vmul.f32 %v542_v14, %v440_v18  ;;  %v601_v21 = vmul.f32 %v543_v15, %v440_v18  ;;  %v598_v22 = vmul.f32 %v540_v16, %v436_v19  ;;  %v599_v23 = vmul.f32 %v541_v17, %v436_v19 }
 0x201   : > { %658 = vst [vmem:[%s1403_s25 + $0x70] sm:$0xff] %v600_v20  ;;  %659 = vst [vmem:[%s1403_s25 + $0x78] sm:$0xff] %v601_v21  ;;  %v570_v20 = vld [vmem:[%s1382_s14 + $0x150] sm:$0xff]  ;;  %v571_v21 = vld [vmem:[%s1382_s14 + $0x158] sm:$0xff] }
 0x202   : > { %656 = vst [vmem:[%s1403_s25 + $0x60] sm:$0xff] %v598_v22  ;;  %657 = vst [vmem:[%s1403_s25 + $0x68] sm:$0xff] %v599_v23  ;;  %v448_v28 = vpop.permute.xlu1 %447  ;;  %v444_v29 = vpop.permute.xlu0 %443  ;;  %v568_v22 = vld [vmem:[%s1382_s14 + $0x140] sm:$0xff]  ;;  %v569_v23 = vld [vmem:[%s1382_s14 + $0x148] sm:$0xff] }
 0x203   : > { %v604_v30 = vmul.f32 %v546_v24, %v448_v28  ;;  %v605_v31 = vmul.f32 %v547_v25, %v448_v28  ;;  %v602_v32 = vmul.f32 %v544_v26, %v444_v29  ;;  %v603_v33 = vmul.f32 %v545_v27, %v444_v29 }
 0x205   : > { %662 = vst [vmem:[%s1403_s25 + $0x90] sm:$0xff] %v604_v30  ;;  %663 = vst [vmem:[%s1403_s25 + $0x98] sm:$0xff] %v605_v31  ;;  %v574_v30 = vld [vmem:[%s1382_s14 + $0x170] sm:$0xff]  ;;  %v575_v31 = vld [vmem:[%s1382_s14 + $0x178] sm:$0xff] }
 0x206   : > { %660 = vst [vmem:[%s1403_s25 + $0x80] sm:$0xff] %v602_v32  ;;  %661 = vst [vmem:[%s1403_s25 + $0x88] sm:$0xff] %v603_v33  ;;  %v456_v38 = vpop.permute.xlu1 %455  ;;  %v452_v39 = vpop.permute.xlu0 %451  ;;  %v572_v32 = vld [vmem:[%s1382_s14 + $0x160] sm:$0xff]  ;;  %v573_v33 = vld [vmem:[%s1382_s14 + $0x168] sm:$0xff] }
 0x207   : > { %v608_v40 = vmul.f32 %v550_v34, %v456_v38  ;;  %v609_v41 = vmul.f32 %v551_v35, %v456_v38  ;;  %v606_v42 = vmul.f32 %v548_v36, %v452_v39  ;;  %v607_v43 = vmul.f32 %v549_v37, %v452_v39 }
 0x209   : > { %666 = vst [vmem:[%s1403_s25 + $0xb0] sm:$0xff] %v608_v40  ;;  %667 = vst [vmem:[%s1403_s25 + $0xb8] sm:$0xff] %v609_v41  ;;  %v578_v40 = vld [vmem:[%s1382_s14 + $0x190] sm:$0xff]  ;;  %v579_v41 = vld [vmem:[%s1382_s14 + $0x198] sm:$0xff] }
 0x20a   : > { %664 = vst [vmem:[%s1403_s25 + $0xa0] sm:$0xff] %v606_v42  ;;  %665 = vst [vmem:[%s1403_s25 + $0xa8] sm:$0xff] %v607_v43  ;;  %v464_v48 = vpop.permute.xlu1 %463  ;;  %v460_v49 = vpop.permute.xlu0 %459  ;;  %v576_v42 = vld [vmem:[%s1382_s14 + $0x180] sm:$0xff]  ;;  %v577_v43 = vld [vmem:[%s1382_s14 + $0x188] sm:$0xff] }
 0x20b   : > { %v612_v50 = vmul.f32 %v554_v44, %v464_v48  ;;  %v613_v51 = vmul.f32 %v555_v45, %v464_v48  ;;  %v610_v52 = vmul.f32 %v552_v46, %v460_v49  ;;  %v611_v53 = vmul.f32 %v553_v47, %v460_v49 }
 0x20d   : > { %670 = vst [vmem:[%s1403_s25 + $0xd0] sm:$0xff] %v612_v50  ;;  %671 = vst [vmem:[%s1403_s25 + $0xd8] sm:$0xff] %v613_v51  ;;  %v582_v50 = vld [vmem:[%s1382_s14 + $0x1b0] sm:$0xff]  ;;  %v583_v51 = vld [vmem:[%s1382_s14 + $0x1b8] sm:$0xff] }
 0x20e   : > { %668 = vst [vmem:[%s1403_s25 + $0xc0] sm:$0xff] %v610_v52  ;;  %669 = vst [vmem:[%s1403_s25 + $0xc8] sm:$0xff] %v611_v53  ;;  %v472_v58 = vpop.permute.xlu1 %471  ;;  %v468_v59 = vpop.permute.xlu0 %467  ;;  %v580_v52 = vld [vmem:[%s1382_s14 + $0x1a0] sm:$0xff]  ;;  %v581_v53 = vld [vmem:[%s1382_s14 + $0x1a8] sm:$0xff] }
 0x20f   : > { %v616_v60 = vmul.f32 %v558_v54, %v472_v58  ;;  %v617_v61 = vmul.f32 %v559_v55, %v472_v58  ;;  %v614_v62 = vmul.f32 %v556_v56, %v468_v59  ;;  %v615_v63 = vmul.f32 %v557_v57, %v468_v59 }
 0x211   : > { %674 = vst [vmem:[%s1403_s25 + $0xf0] sm:$0xff] %v616_v60  ;;  %675 = vst [vmem:[%s1403_s25 + $0xf8] sm:$0xff] %v617_v61  ;;  %v584_v60 = vld [vmem:[%s1382_s14 + $0x1c0] sm:$0xff]  ;;  %v585_v61 = vld [vmem:[%s1382_s14 + $0x1c8] sm:$0xff] }
 0x212   : > { %672 = vst [vmem:[%s1403_s25 + $0xe0] sm:$0xff] %v614_v62  ;;  %673 = vst [vmem:[%s1403_s25 + $0xe8] sm:$0xff] %v615_v63  ;;  %v483_v4 = vpop.permute.xlu1 %482  ;;  %v479_v5 = vpop.permute.xlu0 %478 }
 0x213   : > { %v620_v6 = vmul.f32 %v562_v0, %v483_v4  ;;  %v621_v7 = vmul.f32 %v563_v1, %v483_v4  ;;  %v618_v8 = vmul.f32 %v560_v2, %v479_v5  ;;  %v619_v9 = vmul.f32 %v561_v3, %v479_v5 }
 0x215   : > { %678 = vst [vmem:[%s1403_s25 + $0x110] sm:$0xff] %v620_v6  ;;  %679 = vst [vmem:[%s1403_s25 + $0x118] sm:$0xff] %v621_v7 }
 0x216   : > { %676 = vst [vmem:[%s1403_s25 + $0x100] sm:$0xff] %v618_v8  ;;  %677 = vst [vmem:[%s1403_s25 + $0x108] sm:$0xff] %v619_v9  ;;  %v491_v14 = vpop.permute.xlu1 %490  ;;  %v487_v15 = vpop.permute.xlu0 %486 }
 0x217   : > { %v624_v16 = vmul.f32 %v566_v10, %v491_v14  ;;  %v625_v17 = vmul.f32 %v567_v11, %v491_v14  ;;  %v622_v18 = vmul.f32 %v564_v12, %v487_v15  ;;  %v623_v19 = vmul.f32 %v565_v13, %v487_v15 }
 0x219   : > { %682 = vst [vmem:[%s1403_s25 + $0x130] sm:$0xff] %v624_v16  ;;  %683 = vst [vmem:[%s1403_s25 + $0x138] sm:$0xff] %v625_v17 }
 0x21a   : > { %680 = vst [vmem:[%s1403_s25 + $0x120] sm:$0xff] %v622_v18  ;;  %681 = vst [vmem:[%s1403_s25 + $0x128] sm:$0xff] %v623_v19  ;;  %v499_v24 = vpop.permute.xlu1 %498  ;;  %v495_v25 = vpop.permute.xlu0 %494 }
 0x21b   : > { %v628_v26 = vmul.f32 %v570_v20, %v499_v24  ;;  %v629_v27 = vmul.f32 %v571_v21, %v499_v24  ;;  %v626_v28 = vmul.f32 %v568_v22, %v495_v25  ;;  %v627_v29 = vmul.f32 %v569_v23, %v495_v25 }
 0x21d   : > { %686 = vst [vmem:[%s1403_s25 + $0x150] sm:$0xff] %v628_v26  ;;  %687 = vst [vmem:[%s1403_s25 + $0x158] sm:$0xff] %v629_v27 }
 0x21e   : > { %684 = vst [vmem:[%s1403_s25 + $0x140] sm:$0xff] %v626_v28  ;;  %685 = vst [vmem:[%s1403_s25 + $0x148] sm:$0xff] %v627_v29  ;;  %v507_v34 = vpop.permute.xlu1 %506  ;;  %v503_v35 = vpop.permute.xlu0 %502 }
 0x21f   : > { %v632_v36 = vmul.f32 %v574_v30, %v507_v34  ;;  %v633_v37 = vmul.f32 %v575_v31, %v507_v34  ;;  %v630_v38 = vmul.f32 %v572_v32, %v503_v35  ;;  %v631_v39 = vmul.f32 %v573_v33, %v503_v35 }
 0x221   : > { %690 = vst [vmem:[%s1403_s25 + $0x170] sm:$0xff] %v632_v36  ;;  %691 = vst [vmem:[%s1403_s25 + $0x178] sm:$0xff] %v633_v37 }
 0x222   : > { %688 = vst [vmem:[%s1403_s25 + $0x160] sm:$0xff] %v630_v38  ;;  %689 = vst [vmem:[%s1403_s25 + $0x168] sm:$0xff] %v631_v39  ;;  %v515_v44 = vpop.permute.xlu1 %514  ;;  %v511_v45 = vpop.permute.xlu0 %510 }
 0x223   : > { %v636_v46 = vmul.f32 %v578_v40, %v515_v44  ;;  %v637_v47 = vmul.f32 %v579_v41, %v515_v44  ;;  %v634_v48 = vmul.f32 %v576_v42, %v511_v45  ;;  %v635_v49 = vmul.f32 %v577_v43, %v511_v45 }
 0x225   : > { %694 = vst [vmem:[%s1403_s25 + $0x190] sm:$0xff] %v636_v46  ;;  %695 = vst [vmem:[%s1403_s25 + $0x198] sm:$0xff] %v637_v47 }
 0x226   : > { %692 = vst [vmem:[%s1403_s25 + $0x180] sm:$0xff] %v634_v48  ;;  %693 = vst [vmem:[%s1403_s25 + $0x188] sm:$0xff] %v635_v49  ;;  %v523_v54 = vpop.permute.xlu1 %522  ;;  %v519_v55 = vpop.permute.xlu0 %518 }
 0x227   : > { %v640_v56 = vmul.f32 %v582_v50, %v523_v54  ;;  %v641_v57 = vmul.f32 %v583_v51, %v523_v54  ;;  %v638_v58 = vmul.f32 %v580_v52, %v519_v55  ;;  %v639_v59 = vmul.f32 %v581_v53, %v519_v55 }
 0x229   : > { %698 = vst [vmem:[%s1403_s25 + $0x1b0] sm:$0xff] %v640_v56  ;;  %699 = vst [vmem:[%s1403_s25 + $0x1b8] sm:$0xff] %v641_v57 }
 0x22a   : > { %696 = vst [vmem:[%s1403_s25 + $0x1a0] sm:$0xff] %v638_v58  ;;  %697 = vst [vmem:[%s1403_s25 + $0x1a8] sm:$0xff] %v639_v59  ;;  %v527_v62 = vpop.permute.xlu0 %526 }
 0x22b   : > { %v642_v63 = vmul.f32 %v584_v60, %v527_v62  ;;  %v643_v0 = vmul.f32 %v585_v61, %v527_v62 }
 0x22d   : > { %700 = vst [vmem:[%s1403_s25 + $0x1c0] sm:$0xff] %v642_v63  ;;  %701 = vst [vmem:[%s1403_s25 + $0x1c8] sm:$0xff] %v643_v0 }
 0x22e   : > { %1064 = shalt.err (!%p1061_p5)
}
 0x22f   : > { %s1065_s3 = scalar_lea.hbm %s1516_s18, 7424  ;;  %s1069_s24 = scalar_lea.hbm %s1573_s4, 14848 }
 0x230   : > { %p1066_p12 = scmp.ne.s32.totalorder %s1516_s18, %s1065_s3  ;;  %p1070_p11 = scmp.lt.u32.totalorder %s1516_s18, %s1573_s4 }
 0x231   : > { %p1071_p6 = scmp.lt.u32.totalorder %s1069_s24, %s1065_s3  ;;  %p1073_p8 = scmp.lt.u32.totalorder %s1065_s3, %s1516_s18 }
 0x232   : > { %p1067_p10 = pnand %p1066_p12, %p1594_p13 }
 0x233   : > { %p1072_p1 = por %p1071_p6, %p1070_p11 }
 0x234   : > { %p1068_p9 = pneg %p1067_p10 }
 0x235   : > { %p1074_p4 = por %p1073_p8, %p1072_p1 }
 0x237   : > { %p1075_p7 = pnand %p1074_p4, %p1068_p9 }
 0x239   : > { %1078 = shalt.err (!%p1075_p7)
}
 0x23a   : > { %s1151_s10 = smov 256   ;;  %s1152_s12 = smov 16  }
 0x23b   : > { %879 = dma.vmem_to_hbm [thread:$0]  (%p1594_p13), %s1518_s26, 7424, %s1516_s18, %s703_s29, %s1151_s10, %s1151_s10, %s1152_s12  }
 0x23c PF: > { %s733_s25 = sand.u32 1, %s1121_s15   ;;  %p1595_p0 = scmp.ne.s32.totalorder %s1586_s6, 0 }
 0x23d   : > { %p1596_p3 = scmp.ge.s32.totalorder %s1141_s20, 2  ;;  %s734_s13 = scalar_lea.sflag [#allocation4], %s733_s25 }
 0x23f   : > { %p893_p2 = pnand %p1596_p3, %p1595_p0 }
 0x241   : > { %1116 = dma.done.wait (!%p893_p2), %s734_s13, 7424  }
 0x242   : > { %1118 = vsyncadd (!%p893_p2), %s734_s13, 4294959872  ;;  %s21_s20 = sadd.s32 1, %s1141_s20   ;;  %s1597_s30 = sld [smem:[#allocation13_spill]] }
 0x243   : > { %p18_p5 = scmp.ge.s32.totalorder %s21_s20, 4   ;;  %s1598_s15 = smov %s1125_s16 }
 0x244   : > { %s1599_s16 = smov %s1129_s17  ;;  %s1600_s17 = smov %s1226_s27 }
 0x245   : > { %s1601_s18 = smov %s1137_s19  ;;  %20 = sbr.rel (!%p18_p5) target bundleno = 10 (0xa), region = 96 }
 0x248   : > { %s1602_s19 = smov %s1597_s30 }
 0x24c   :  { %739 = vsyncpa [#allocation3], 1 }
 0x24d   :  { %741 = vsyncpa [#allocation3 + $0x1], 1 }
 0x24e   :  { %742 = vsyncpa [#allocation6], 1 }
 0x24f   :  { %743 = vsyncpa [#allocation4], 1 }
 0x250   :  { %745 = vsyncpa [#allocation4 + $0x1], 1 }

</bundles_post_ra>
